<compile_context>
chip_gen: v7x
topology: tpu7x:2x2x1
jax: 0.10.0
libtpu: 0.0.40
codegen_flags: <defaults>
</compile_context>

<pallas_src>
import jax
import jax.numpy as jnp
import numpy as np
from jax import lax
from jax.experimental import pallas as pl
from jax.experimental.pallas import tpu as pltpu


def inverted_residual_stride1(x_nchw, w1, wdw, w2, bn_packed):
    """stride=1 InvertedResidual forward. NCHW in / NCHW out (free reshapes only)."""
    N, C, H, W = x_nchw.shape
    Cb = C // 2
    HW = H * W
    assert C == 2 * Cb
    assert HW % 128 == 0 and C % 8 == 0

    sc1, sh1, sc2, sh2, sc3, sh3 = [bn_packed[i] for i in range(6)]

    # ---- fold BatchNorms into conv weights / bias vectors (wrapper-time) ----
    w1_eff = sc1[:, None] * w1                               # (out, in)
    w2_eff = (sc3[:, None] * w2) * sc2[None, :]              # (out, in)
    bias1_eff = sh1                                          # (Cb,)
    bias2_eff = sc3 * (w2 @ sh2) + sh3                       # (Cb,)

    # Single column table: lane k selects one (Cb_out, 1) multiplier column.
    #   lanes [0, Cb)   : conv1 column for branch-2 input channel k
    #   lanes [Cb, 2Cb) : conv2 column for depthwise-output channel k - Cb
    #   lane  2Cb       : bias1 (pre-ReLU)     lane 2Cb+1 : bias2 (pre-ReLU)
    cols = jnp.concatenate(
        [w1_eff, w2_eff, bias1_eff[:, None], bias2_eff[:, None]],
        axis=1).astype(jnp.float32)                          # (Cb, 2*Cb + 2)

    # Depthwise 3x3 taps: fuse the per-tap validity mask (rolls wrap on the
    # flat H*W axis, so both row and column borders need masking) into the
    # per-channel weight plane -> one roll + one FMA per tap in the kernel.
    pos = jnp.arange(HW, dtype=jnp.int32)
    hpos, wpos = pos // W, pos % W
    planes, shifts = [], []
    for dh in (-1, 0, 1):
        for dw in (-1, 0, 1):
            valid = ((hpos + dh >= 0) & (hpos + dh < H) &
                     (wpos + dw >= 0) & (wpos + dw < W)).astype(jnp.float32)
            planes.append(wdw[:, dh + 1, dw + 1][:, None] * valid[None, :])
            # out[l] = y[l + dh*W + dw]  ==  roll(y, -(dh*W+dw)) then mask
            shifts.append((-(dh * W + dw)) % HW)
    wm = jnp.stack(planes, axis=0).astype(jnp.float32)       # (9, Cb, HW)

    x_flat = x_nchw.reshape(N, C, HW)                        # free view (NCHW)

    NB = 1                                                   # >=2 grid steps -> both v7x TCs busy
    grid = (N // NB,)

    def kernel(x_ref, cols_ref, wm_ref, o_ref):
        x = x_ref[...]                                       # (NB, C, HW)

        # ---- 1x1 conv (folded BN1) + ReLU on branch-2 input channels ----
        # Cb is far too small for the MXU at this size -> unrolled VPU
        # broadcast-FMAs (sublane broadcast of one channel is absorbed by the
        # otherwise-idle XLU / vld slots).
        y = x[:, Cb:Cb + 1, :] * cols_ref[:, 0:1]
        for ci in range(1, Cb):
            y = y + x[:, Cb + ci:Cb + ci + 1, :] * cols_ref[:, ci:ci + 1]
        y = jnp.maximum(y + cols_ref[:, 2 * Cb:2 * Cb + 1], 0.0)

        # ---- depthwise 3x3, stride 1, pad 1: XLU rolls + fused mask*weight ----
        d = y * wm_ref[4]                                    # center tap, no roll
        for t in range(9):
            if t == 4:
                continue
            d = d + pltpu.roll(y, shifts[t], axis=2) * wm_ref[t]

        # ---- 1x1 conv (folded BN2+BN3) + ReLU -> half-width branch2 slab ----
        b2 = d[:, 0:1, :] * cols_ref[:, Cb:Cb + 1]
        for ci in range(1, Cb):
            b2 = b2 + d[:, ci:ci + 1, :] * cols_ref[:, Cb + ci:Cb + ci + 1]
        b2 = jnp.maximum(b2 + cols_ref[:, 2 * Cb + 1:2 * Cb + 2], 0.0)

        # ---- concat + channel_shuffle(groups=2) fused as direct stores ----
        #   output channel 2j   <- x1[j]      (passthrough, no ReLU)
        #   output channel 2j+1 <- branch2[j]
        # Equivalent to o_ref[:, pl.ds(0/1, Cb, 2), :] = ...; static-index
        # per-channel stores chosen for unconditional lowering.
        for j in range(Cb):
            o_ref[:, 2 * j, :] = x[:, j, :]
            o_ref[:, 2 * j + 1, :] = b2[:, j, :]

    out_flat = pl.pallas_call(
        kernel,
        out_shape=jax.ShapeDtypeStruct((N, C, HW), jnp.float32),
        grid_spec=pltpu.PrefetchScalarGridSpec(
            num_scalar_prefetch=0,
            grid=grid,
            in_specs=[
                pl.BlockSpec((NB, C, HW), lambda i: (i, 0, 0)),
                pl.BlockSpec(cols.shape, lambda i: (0, 0)),
                pl.BlockSpec(wm.shape, lambda i: (0, 0, 0)),
            ],
            out_specs=pl.BlockSpec((NB, C, HW), lambda i: (i, 0, 0)),
        ),
        compiler_params=pltpu.CompilerParams(
            dimension_semantics=("parallel",)),
    )(x_flat, cols, wm)

    return out_flat.reshape(N, C, H, W)


def reference_nchw(x, w1, wdw, w2, bn_packed):
    """Pure-JAX reference mirroring the PyTorch forward (eval-mode BN)."""
    N, C, H, W = x.shape
    Cb = C // 2
    x1, x2 = x[:, :Cb], x[:, Cb:]
    s1, b1, s2, b2, s3, b3 = [bn_packed[i][None, :, None, None]
                              for i in range(6)]
    dn = ('NCHW', 'OIHW', 'NCHW')
    y = lax.conv_general_dilated(x2, w1[:, :, None, None], (1, 1), 'VALID',
                                 dimension_numbers=dn)
    y = jnp.maximum(y * s1 + b1, 0.0)
    y = lax.conv_general_dilated(y, wdw[:, None, :, :], (1, 1),
                                 ((1, 1), (1, 1)), dimension_numbers=dn,
                                 feature_group_count=Cb)
    y = y * s2 + b2
    y = lax.conv_general_dilated(y, w2[:, :, None, None], (1, 1), 'VALID',
                                 dimension_numbers=dn)
    y = jnp.maximum(y * s3 + b3, 0.0)
    out = jnp.concatenate([x1, y], axis=1)
    out = out.reshape(N, 2, Cb, H, W).transpose(0, 2, 1, 3, 4)
    return out.reshape(N, C, H, W)


def _fold_bn(key, cb, eps=1e-5):
    k1, k2, k3, k4 = jax.random.split(key, 4)
    gamma = 1.0 + 0.1 * jax.random.normal(k1, (cb,), jnp.float32)
    beta = 0.1 * jax.random.normal(k2, (cb,), jnp.float32)
    mean = 0.1 * jax.random.normal(k3, (cb,), jnp.float32)
    var = 0.5 + jnp.abs(jax.random.normal(k4, (cb,), jnp.float32)) * 0.5
    scale = gamma / jnp.sqrt(var + eps)
    shift = beta - mean * scale
    return scale, shift


if __name__ == "__main__":
    # Module config: stride=1, input_c = output_c = 16 -> branch_features = 8.
    N, C, H, W = 2, 16, 16, 16
    Cb = C // 2

    key = jax.random.PRNGKey(0)
    kx, kw1, kwd, kw2, kb1, kb2, kb3 = jax.random.split(key, 7)

    x = jax.random.normal(kx, (N, C, H, W), jnp.float32)           # NCHW input
    w1 = 0.3 * jax.random.normal(kw1, (Cb, Cb), jnp.float32)       # 1x1 (out,in)
    wdw = 0.3 * jax.random.normal(kwd, (Cb, 3, 3), jnp.float32)    # depthwise
    w2 = 0.3 * jax.random.normal(kw2, (Cb, Cb), jnp.float32)       # 1x1 (out,in)

    s1, b1 = _fold_bn(kb1, Cb)
    s2, b2 = _fold_bn(kb2, Cb)
    s3, b3 = _fold_bn(kb3, Cb)
    bn_packed = jnp.stack([s1, b1, s2, b2, s3, b3], axis=0)        # (6, Cb)

    out = inverted_residual_stride1(x, w1, wdw, w2, bn_packed)
    out = jax.block_until_ready(out)

    ref = jax.block_until_ready(reference_nchw(x, w1, wdw, w2, bn_packed))
    np.testing.assert_allclose(np.asarray(out), np.asarray(ref),
                               rtol=2e-4, atol=2e-4)
    print("KERNEL_OK")
</pallas_src>

<mosaic_0001>
module attributes {stable_mosaic.version = 11 : i64} {
  func.func @kernel(%arg0: i32, %arg1: memref<1x16x256xf32, #tpu.memory_space<vmem>>, %arg2: memref<8x18xf32, #tpu.memory_space<vmem>>, %arg3: memref<9x8x256xf32, #tpu.memory_space<vmem>>, %arg4: memref<1x16x256xf32, #tpu.memory_space<vmem>>) attributes {dimension_semantics = [#tpu.dimension_semantics<parallel>], iteration_bounds = array<i64: 2>, scalar_prefetch = 0 : i64, scratch_operands = 0 : i64, tpu.core_type = #tpu.core_type<tc>, window_params = [{transform_indices = @transform_0, window_bounds = array<i64: 1, 16, 256>}, {pipeline_mode = #tpu.pipeline_mode<synchronous>, transform_indices = @transform_1, window_bounds = array<i64: 8, 18>}, {pipeline_mode = #tpu.pipeline_mode<synchronous>, transform_indices = @transform_2, window_bounds = array<i64: 9, 8, 256>}, {transform_indices = @transform_3, window_bounds = array<i64: 1, 16, 256>}]} {
    %c0 = arith.constant 0 : index
    %c0_0 = arith.constant 0 : index
    %c0_1 = arith.constant 0 : index
    %0 = vector.load %arg1[%c0, %c0_0, %c0_1] : memref<1x16x256xf32, #tpu.memory_space<vmem>>, vector<1x16x256xf32>
    %1 = vector.extract_strided_slice %0 {offsets = [0, 8, 0], sizes = [1, 1, 256], strides = [1, 1, 1]} : vector<1x16x256xf32> to vector<1x1x256xf32>
    %c0_2 = arith.constant 0 : index
    %c0_3 = arith.constant 0 : index
    %2 = vector.load %arg2[%c0_2, %c0_3] : memref<8x18xf32, #tpu.memory_space<vmem>>, vector<8x1xf32>
    %3 = vector.shape_cast %2 : vector<8x1xf32> to vector<1x8x1xf32>
    %4 = vector.broadcast %1 : vector<1x1x256xf32> to vector<1x8x256xf32>
    %5 = vector.broadcast %3 : vector<1x8x1xf32> to vector<1x8x256xf32>
    %6 = arith.mulf %4, %5 : vector<1x8x256xf32>
    %7 = vector.extract_strided_slice %0 {offsets = [0, 9, 0], sizes = [1, 1, 256], strides = [1, 1, 1]} : vector<1x16x256xf32> to vector<1x1x256xf32>
    %c0_4 = arith.constant 0 : index
    %c1 = arith.constant 1 : index
    %8 = vector.load %arg2[%c0_4, %c1] : memref<8x18xf32, #tpu.memory_space<vmem>>, vector<8x1xf32>
    %9 = vector.shape_cast %8 : vector<8x1xf32> to vector<1x8x1xf32>
    %10 = vector.broadcast %7 : vector<1x1x256xf32> to vector<1x8x256xf32>
    %11 = vector.broadcast %9 : vector<1x8x1xf32> to vector<1x8x256xf32>
    %12 = arith.mulf %10, %11 : vector<1x8x256xf32>
    %13 = arith.addf %6, %12 : vector<1x8x256xf32>
    %14 = vector.extract_strided_slice %0 {offsets = [0, 10, 0], sizes = [1, 1, 256], strides = [1, 1, 1]} : vector<1x16x256xf32> to vector<1x1x256xf32>
    %c0_5 = arith.constant 0 : index
    %c2 = arith.constant 2 : index
    %15 = vector.load %arg2[%c0_5, %c2] : memref<8x18xf32, #tpu.memory_space<vmem>>, vector<8x1xf32>
    %16 = vector.shape_cast %15 : vector<8x1xf32> to vector<1x8x1xf32>
    %17 = vector.broadcast %14 : vector<1x1x256xf32> to vector<1x8x256xf32>
    %18 = vector.broadcast %16 : vector<1x8x1xf32> to vector<1x8x256xf32>
    %19 = arith.mulf %17, %18 : vector<1x8x256xf32>
    %20 = arith.addf %13, %19 : vector<1x8x256xf32>
    %21 = vector.extract_strided_slice %0 {offsets = [0, 11, 0], sizes = [1, 1, 256], strides = [1, 1, 1]} : vector<1x16x256xf32> to vector<1x1x256xf32>
    %c0_6 = arith.constant 0 : index
    %c3 = arith.constant 3 : index
    %22 = vector.load %arg2[%c0_6, %c3] : memref<8x18xf32, #tpu.memory_space<vmem>>, vector<8x1xf32>
    %23 = vector.shape_cast %22 : vector<8x1xf32> to vector<1x8x1xf32>
    %24 = vector.broadcast %21 : vector<1x1x256xf32> to vector<1x8x256xf32>
    %25 = vector.broadcast %23 : vector<1x8x1xf32> to vector<1x8x256xf32>
    %26 = arith.mulf %24, %25 : vector<1x8x256xf32>
    %27 = arith.addf %20, %26 : vector<1x8x256xf32>
    %28 = vector.extract_strided_slice %0 {offsets = [0, 12, 0], sizes = [1, 1, 256], strides = [1, 1, 1]} : vector<1x16x256xf32> to vector<1x1x256xf32>
    %c0_7 = arith.constant 0 : index
    %c4 = arith.constant 4 : index
    %29 = vector.load %arg2[%c0_7, %c4] : memref<8x18xf32, #tpu.memory_space<vmem>>, vector<8x1xf32>
    %30 = vector.shape_cast %29 : vector<8x1xf32> to vector<1x8x1xf32>
    %31 = vector.broadcast %28 : vector<1x1x256xf32> to vector<1x8x256xf32>
    %32 = vector.broadcast %30 : vector<1x8x1xf32> to vector<1x8x256xf32>
    %33 = arith.mulf %31, %32 : vector<1x8x256xf32>
    %34 = arith.addf %27, %33 : vector<1x8x256xf32>
    %35 = vector.extract_strided_slice %0 {offsets = [0, 13, 0], sizes = [1, 1, 256], strides = [1, 1, 1]} : vector<1x16x256xf32> to vector<1x1x256xf32>
    %c0_8 = arith.constant 0 : index
    %c5 = arith.constant 5 : index
    %36 = vector.load %arg2[%c0_8, %c5] : memref<8x18xf32, #tpu.memory_space<vmem>>, vector<8x1xf32>
    %37 = vector.shape_cast %36 : vector<8x1xf32> to vector<1x8x1xf32>
    %38 = vector.broadcast %35 : vector<1x1x256xf32> to vector<1x8x256xf32>
    %39 = vector.broadcast %37 : vector<1x8x1xf32> to vector<1x8x256xf32>
    %40 = arith.mulf %38, %39 : vector<1x8x256xf32>
    %41 = arith.addf %34, %40 : vector<1x8x256xf32>
    %42 = vector.extract_strided_slice %0 {offsets = [0, 14, 0], sizes = [1, 1, 256], strides = [1, 1, 1]} : vector<1x16x256xf32> to vector<1x1x256xf32>
    %c0_9 = arith.constant 0 : index
    %c6 = arith.constant 6 : index
    %43 = vector.load %arg2[%c0_9, %c6] : memref<8x18xf32, #tpu.memory_space<vmem>>, vector<8x1xf32>
    %44 = vector.shape_cast %43 : vector<8x1xf32> to vector<1x8x1xf32>
    %45 = vector.broadcast %42 : vector<1x1x256xf32> to vector<1x8x256xf32>
    %46 = vector.broadcast %44 : vector<1x8x1xf32> to vector<1x8x256xf32>
    %47 = arith.mulf %45, %46 : vector<1x8x256xf32>
    %48 = arith.addf %41, %47 : vector<1x8x256xf32>
    %49 = vector.extract_strided_slice %0 {offsets = [0, 15, 0], sizes = [1, 1, 256], strides = [1, 1, 1]} : vector<1x16x256xf32> to vector<1x1x256xf32>
    %c0_10 = arith.constant 0 : index
    %c7 = arith.constant 7 : index
    %50 = vector.load %arg2[%c0_10, %c7] : memref<8x18xf32, #tpu.memory_space<vmem>>, vector<8x1xf32>
    %51 = vector.shape_cast %50 : vector<8x1xf32> to vector<1x8x1xf32>
    %52 = vector.broadcast %49 : vector<1x1x256xf32> to vector<1x8x256xf32>
    %53 = vector.broadcast %51 : vector<1x8x1xf32> to vector<1x8x256xf32>
    %54 = arith.mulf %52, %53 : vector<1x8x256xf32>
    %55 = arith.addf %48, %54 : vector<1x8x256xf32>
    %c0_11 = arith.constant 0 : index
    %c16 = arith.constant 16 : index
    %56 = vector.load %arg2[%c0_11, %c16] : memref<8x18xf32, #tpu.memory_space<vmem>>, vector<8x1xf32>
    %57 = vector.shape_cast %56 : vector<8x1xf32> to vector<1x8x1xf32>
    %58 = vector.broadcast %57 : vector<1x8x1xf32> to vector<1x8x256xf32>
    %59 = arith.addf %55, %58 : vector<1x8x256xf32>
    %cst = arith.constant 0.000000e+00 : f32
    %60 = vector.broadcast %cst : f32 to vector<1x8x256xf32>
    %61 = arith.maximumf %59, %60 : vector<1x8x256xf32>
    %c4_12 = arith.constant 4 : index
    %c0_13 = arith.constant 0 : index
    %c0_14 = arith.constant 0 : index
    %62 = vector.load %arg3[%c4_12, %c0_13, %c0_14] : memref<9x8x256xf32, #tpu.memory_space<vmem>>, vector<1x8x256xf32>
    %63 = vector.shape_cast %62 : vector<1x8x256xf32> to vector<8x256xf32>
    %64 = vector.shape_cast %63 : vector<8x256xf32> to vector<1x8x256xf32>
    %65 = arith.mulf %61, %64 : vector<1x8x256xf32>
    %c17_i32 = arith.constant 17 : i32
    %66 = tpu.dynamic_rotate %61 by %c17_i32 dim 2 : vector<1x8x256xf32>, i32 -> vector<1x8x256xf32>
    %c0_15 = arith.constant 0 : index
    %c0_16 = arith.constant 0 : index
    %c0_17 = arith.constant 0 : index
    %67 = vector.load %arg3[%c0_15, %c0_16, %c0_17] : memref<9x8x256xf32, #tpu.memory_space<vmem>>, vector<1x8x256xf32>
    %68 = vector.shape_cast %67 : vector<1x8x256xf32> to vector<8x256xf32>
    %69 = vector.shape_cast %68 : vector<8x256xf32> to vector<1x8x256xf32>
    %70 = arith.mulf %66, %69 : vector<1x8x256xf32>
    %71 = arith.addf %65, %70 : vector<1x8x256xf32>
    %c16_i32 = arith.constant 16 : i32
    %72 = tpu.dynamic_rotate %61 by %c16_i32 dim 2 : vector<1x8x256xf32>, i32 -> vector<1x8x256xf32>
    %c1_18 = arith.constant 1 : index
    %c0_19 = arith.constant 0 : index
    %c0_20 = arith.constant 0 : index
    %73 = vector.load %arg3[%c1_18, %c0_19, %c0_20] : memref<9x8x256xf32, #tpu.memory_space<vmem>>, vector<1x8x256xf32>
    %74 = vector.shape_cast %73 : vector<1x8x256xf32> to vector<8x256xf32>
    %75 = vector.shape_cast %74 : vector<8x256xf32> to vector<1x8x256xf32>
    %76 = arith.mulf %72, %75 : vector<1x8x256xf32>
    %77 = arith.addf %71, %76 : vector<1x8x256xf32>
    %c15_i32 = arith.constant 15 : i32
    %78 = tpu.dynamic_rotate %61 by %c15_i32 dim 2 : vector<1x8x256xf32>, i32 -> vector<1x8x256xf32>
    %c2_21 = arith.constant 2 : index
    %c0_22 = arith.constant 0 : index
    %c0_23 = arith.constant 0 : index
    %79 = vector.load %arg3[%c2_21, %c0_22, %c0_23] : memref<9x8x256xf32, #tpu.memory_space<vmem>>, vector<1x8x256xf32>
    %80 = vector.shape_cast %79 : vector<1x8x256xf32> to vector<8x256xf32>
    %81 = vector.shape_cast %80 : vector<8x256xf32> to vector<1x8x256xf32>
    %82 = arith.mulf %78, %81 : vector<1x8x256xf32>
    %83 = arith.addf %77, %82 : vector<1x8x256xf32>
    %c1_i32 = arith.constant 1 : i32
    %84 = tpu.dynamic_rotate %61 by %c1_i32 dim 2 : vector<1x8x256xf32>, i32 -> vector<1x8x256xf32>
    %c3_24 = arith.constant 3 : index
    %c0_25 = arith.constant 0 : index
    %c0_26 = arith.constant 0 : index
    %85 = vector.load %arg3[%c3_24, %c0_25, %c0_26] : memref<9x8x256xf32, #tpu.memory_space<vmem>>, vector<1x8x256xf32>
    %86 = vector.shape_cast %85 : vector<1x8x256xf32> to vector<8x256xf32>
    %87 = vector.shape_cast %86 : vector<8x256xf32> to vector<1x8x256xf32>
    %88 = arith.mulf %84, %87 : vector<1x8x256xf32>
    %89 = arith.addf %83, %88 : vector<1x8x256xf32>
    %c255_i32 = arith.constant 255 : i32
    %90 = tpu.dynamic_rotate %61 by %c255_i32 dim 2 : vector<1x8x256xf32>, i32 -> vector<1x8x256xf32>
    %c5_27 = arith.constant 5 : index
    %c0_28 = arith.constant 0 : index
    %c0_29 = arith.constant 0 : index
    %91 = vector.load %arg3[%c5_27, %c0_28, %c0_29] : memref<9x8x256xf32, #tpu.memory_space<vmem>>, vector<1x8x256xf32>
    %92 = vector.shape_cast %91 : vector<1x8x256xf32> to vector<8x256xf32>
    %93 = vector.shape_cast %92 : vector<8x256xf32> to vector<1x8x256xf32>
    %94 = arith.mulf %90, %93 : vector<1x8x256xf32>
    %95 = arith.addf %89, %94 : vector<1x8x256xf32>
    %c241_i32 = arith.constant 241 : i32
    %96 = tpu.dynamic_rotate %61 by %c241_i32 dim 2 : vector<1x8x256xf32>, i32 -> vector<1x8x256xf32>
    %c6_30 = arith.constant 6 : index
    %c0_31 = arith.constant 0 : index
    %c0_32 = arith.constant 0 : index
    %97 = vector.load %arg3[%c6_30, %c0_31, %c0_32] : memref<9x8x256xf32, #tpu.memory_space<vmem>>, vector<1x8x256xf32>
    %98 = vector.shape_cast %97 : vector<1x8x256xf32> to vector<8x256xf32>
    %99 = vector.shape_cast %98 : vector<8x256xf32> to vector<1x8x256xf32>
    %100 = arith.mulf %96, %99 : vector<1x8x256xf32>
    %101 = arith.addf %95, %100 : vector<1x8x256xf32>
    %c240_i32 = arith.constant 240 : i32
    %102 = tpu.dynamic_rotate %61 by %c240_i32 dim 2 : vector<1x8x256xf32>, i32 -> vector<1x8x256xf32>
    %c7_33 = arith.constant 7 : index
    %c0_34 = arith.constant 0 : index
    %c0_35 = arith.constant 0 : index
    %103 = vector.load %arg3[%c7_33, %c0_34, %c0_35] : memref<9x8x256xf32, #tpu.memory_space<vmem>>, vector<1x8x256xf32>
    %104 = vector.shape_cast %103 : vector<1x8x256xf32> to vector<8x256xf32>
    %105 = vector.shape_cast %104 : vector<8x256xf32> to vector<1x8x256xf32>
    %106 = arith.mulf %102, %105 : vector<1x8x256xf32>
    %107 = arith.addf %101, %106 : vector<1x8x256xf32>
    %c239_i32 = arith.constant 239 : i32
    %108 = tpu.dynamic_rotate %61 by %c239_i32 dim 2 : vector<1x8x256xf32>, i32 -> vector<1x8x256xf32>
    %c8 = arith.constant 8 : index
    %c0_36 = arith.constant 0 : index
    %c0_37 = arith.constant 0 : index
    %109 = vector.load %arg3[%c8, %c0_36, %c0_37] : memref<9x8x256xf32, #tpu.memory_space<vmem>>, vector<1x8x256xf32>
    %110 = vector.shape_cast %109 : vector<1x8x256xf32> to vector<8x256xf32>
    %111 = vector.shape_cast %110 : vector<8x256xf32> to vector<1x8x256xf32>
    %112 = arith.mulf %108, %111 : vector<1x8x256xf32>
    %113 = arith.addf %107, %112 : vector<1x8x256xf32>
    %114 = vector.extract_strided_slice %113 {offsets = [0, 0, 0], sizes = [1, 1, 256], strides = [1, 1, 1]} : vector<1x8x256xf32> to vector<1x1x256xf32>
    %c0_38 = arith.constant 0 : index
    %c8_39 = arith.constant 8 : index
    %115 = vector.load %arg2[%c0_38, %c8_39] : memref<8x18xf32, #tpu.memory_space<vmem>>, vector<8x1xf32>
    %116 = vector.shape_cast %115 : vector<8x1xf32> to vector<1x8x1xf32>
    %117 = vector.broadcast %114 : vector<1x1x256xf32> to vector<1x8x256xf32>
    %118 = vector.broadcast %116 : vector<1x8x1xf32> to vector<1x8x256xf32>
    %119 = arith.mulf %117, %118 : vector<1x8x256xf32>
    %120 = vector.extract_strided_slice %113 {offsets = [0, 1, 0], sizes = [1, 1, 256], strides = [1, 1, 1]} : vector<1x8x256xf32> to vector<1x1x256xf32>
    %c0_40 = arith.constant 0 : index
    %c9 = arith.constant 9 : index
    %121 = vector.load %arg2[%c0_40, %c9] : memref<8x18xf32, #tpu.memory_space<vmem>>, vector<8x1xf32>
    %122 = vector.shape_cast %121 : vector<8x1xf32> to vector<1x8x1xf32>
    %123 = vector.broadcast %120 : vector<1x1x256xf32> to vector<1x8x256xf32>
    %124 = vector.broadcast %122 : vector<1x8x1xf32> to vector<1x8x256xf32>
    %125 = arith.mulf %123, %124 : vector<1x8x256xf32>
    %126 = arith.addf %119, %125 : vector<1x8x256xf32>
    %127 = vector.extract_strided_slice %113 {offsets = [0, 2, 0], sizes = [1, 1, 256], strides = [1, 1, 1]} : vector<1x8x256xf32> to vector<1x1x256xf32>
    %c0_41 = arith.constant 0 : index
    %c10 = arith.constant 10 : index
    %128 = vector.load %arg2[%c0_41, %c10] : memref<8x18xf32, #tpu.memory_space<vmem>>, vector<8x1xf32>
    %129 = vector.shape_cast %128 : vector<8x1xf32> to vector<1x8x1xf32>
    %130 = vector.broadcast %127 : vector<1x1x256xf32> to vector<1x8x256xf32>
    %131 = vector.broadcast %129 : vector<1x8x1xf32> to vector<1x8x256xf32>
    %132 = arith.mulf %130, %131 : vector<1x8x256xf32>
    %133 = arith.addf %126, %132 : vector<1x8x256xf32>
    %134 = vector.extract_strided_slice %113 {offsets = [0, 3, 0], sizes = [1, 1, 256], strides = [1, 1, 1]} : vector<1x8x256xf32> to vector<1x1x256xf32>
    %c0_42 = arith.constant 0 : index
    %c11 = arith.constant 11 : index
    %135 = vector.load %arg2[%c0_42, %c11] : memref<8x18xf32, #tpu.memory_space<vmem>>, vector<8x1xf32>
    %136 = vector.shape_cast %135 : vector<8x1xf32> to vector<1x8x1xf32>
    %137 = vector.broadcast %134 : vector<1x1x256xf32> to vector<1x8x256xf32>
    %138 = vector.broadcast %136 : vector<1x8x1xf32> to vector<1x8x256xf32>
    %139 = arith.mulf %137, %138 : vector<1x8x256xf32>
    %140 = arith.addf %133, %139 : vector<1x8x256xf32>
    %141 = vector.extract_strided_slice %113 {offsets = [0, 4, 0], sizes = [1, 1, 256], strides = [1, 1, 1]} : vector<1x8x256xf32> to vector<1x1x256xf32>
    %c0_43 = arith.constant 0 : index
    %c12 = arith.constant 12 : index
    %142 = vector.load %arg2[%c0_43, %c12] : memref<8x18xf32, #tpu.memory_space<vmem>>, vector<8x1xf32>
    %143 = vector.shape_cast %142 : vector<8x1xf32> to vector<1x8x1xf32>
    %144 = vector.broadcast %141 : vector<1x1x256xf32> to vector<1x8x256xf32>
    %145 = vector.broadcast %143 : vector<1x8x1xf32> to vector<1x8x256xf32>
    %146 = arith.mulf %144, %145 : vector<1x8x256xf32>
    %147 = arith.addf %140, %146 : vector<1x8x256xf32>
    %148 = vector.extract_strided_slice %113 {offsets = [0, 5, 0], sizes = [1, 1, 256], strides = [1, 1, 1]} : vector<1x8x256xf32> to vector<1x1x256xf32>
    %c0_44 = arith.constant 0 : index
    %c13 = arith.constant 13 : index
    %149 = vector.load %arg2[%c0_44, %c13] : memref<8x18xf32, #tpu.memory_space<vmem>>, vector<8x1xf32>
    %150 = vector.shape_cast %149 : vector<8x1xf32> to vector<1x8x1xf32>
    %151 = vector.broadcast %148 : vector<1x1x256xf32> to vector<1x8x256xf32>
    %152 = vector.broadcast %150 : vector<1x8x1xf32> to vector<1x8x256xf32>
    %153 = arith.mulf %151, %152 : vector<1x8x256xf32>
    %154 = arith.addf %147, %153 : vector<1x8x256xf32>
    %155 = vector.extract_strided_slice %113 {offsets = [0, 6, 0], sizes = [1, 1, 256], strides = [1, 1, 1]} : vector<1x8x256xf32> to vector<1x1x256xf32>
    %c0_45 = arith.constant 0 : index
    %c14 = arith.constant 14 : index
    %156 = vector.load %arg2[%c0_45, %c14] : memref<8x18xf32, #tpu.memory_space<vmem>>, vector<8x1xf32>
    %157 = vector.shape_cast %156 : vector<8x1xf32> to vector<1x8x1xf32>
    %158 = vector.broadcast %155 : vector<1x1x256xf32> to vector<1x8x256xf32>
    %159 = vector.broadcast %157 : vector<1x8x1xf32> to vector<1x8x256xf32>
    %160 = arith.mulf %158, %159 : vector<1x8x256xf32>
    %161 = arith.addf %154, %160 : vector<1x8x256xf32>
    %162 = vector.extract_strided_slice %113 {offsets = [0, 7, 0], sizes = [1, 1, 256], strides = [1, 1, 1]} : vector<1x8x256xf32> to vector<1x1x256xf32>
    %c0_46 = arith.constant 0 : index
    %c15 = arith.constant 15 : index
    %163 = vector.load %arg2[%c0_46, %c15] : memref<8x18xf32, #tpu.memory_space<vmem>>, vector<8x1xf32>
    %164 = vector.shape_cast %163 : vector<8x1xf32> to vector<1x8x1xf32>
    %165 = vector.broadcast %162 : vector<1x1x256xf32> to vector<1x8x256xf32>
    %166 = vector.broadcast %164 : vector<1x8x1xf32> to vector<1x8x256xf32>
    %167 = arith.mulf %165, %166 : vector<1x8x256xf32>
    %168 = arith.addf %161, %167 : vector<1x8x256xf32>
    %c0_47 = arith.constant 0 : index
    %c17 = arith.constant 17 : index
    %169 = vector.load %arg2[%c0_47, %c17] : memref<8x18xf32, #tpu.memory_space<vmem>>, vector<8x1xf32>
    %170 = vector.shape_cast %169 : vector<8x1xf32> to vector<1x8x1xf32>
    %171 = vector.broadcast %170 : vector<1x8x1xf32> to vector<1x8x256xf32>
    %172 = arith.addf %168, %171 : vector<1x8x256xf32>
    %cst_48 = arith.constant 0.000000e+00 : f32
    %173 = vector.broadcast %cst_48 : f32 to vector<1x8x256xf32>
    %174 = arith.maximumf %172, %173 : vector<1x8x256xf32>
    %175 = vector.extract_strided_slice %0 {offsets = [0, 0, 0], sizes = [1, 1, 256], strides = [1, 1, 1]} : vector<1x16x256xf32> to vector<1x1x256xf32>
    %176 = vector.shape_cast %175 : vector<1x1x256xf32> to vector<1x256xf32>
    %c0_49 = arith.constant 0 : index
    %c0_50 = arith.constant 0 : index
    %c0_51 = arith.constant 0 : index
    %177 = vector.load %arg4[%c0_49, %c0_50, %c0_51] : memref<1x16x256xf32, #tpu.memory_space<vmem>>, vector<1x1x256xf32>
    %178 = vector.shape_cast %177 : vector<1x1x256xf32> to vector<1x256xf32>
    %179 = vector.shape_cast %176 : vector<1x256xf32> to vector<1x1x256xf32>
    tpu.vector_store %arg4[%c0_49, %c0_50, %c0_51], %179 {strides = array<i32>} : memref<1x16x256xf32, #tpu.memory_space<vmem>>, vector<1x1x256xf32>,
    %180 = vector.extract_strided_slice %174 {offsets = [0, 0, 0], sizes = [1, 1, 256], strides = [1, 1, 1]} : vector<1x8x256xf32> to vector<1x1x256xf32>
    %181 = vector.shape_cast %180 : vector<1x1x256xf32> to vector<1x256xf32>
    %c0_52 = arith.constant 0 : index
    %c1_53 = arith.constant 1 : index
    %c0_54 = arith.constant 0 : index
    %182 = vector.load %arg4[%c0_52, %c1_53, %c0_54] : memref<1x16x256xf32, #tpu.memory_space<vmem>>, vector<1x1x256xf32>
    %183 = vector.shape_cast %182 : vector<1x1x256xf32> to vector<1x256xf32>
    %184 = vector.shape_cast %181 : vector<1x256xf32> to vector<1x1x256xf32>
    tpu.vector_store %arg4[%c0_52, %c1_53, %c0_54], %184 {strides = array<i32>} : memref<1x16x256xf32, #tpu.memory_space<vmem>>, vector<1x1x256xf32>,
    %185 = vector.extract_strided_slice %0 {offsets = [0, 1, 0], sizes = [1, 1, 256], strides = [1, 1, 1]} : vector<1x16x256xf32> to vector<1x1x256xf32>
    %186 = vector.shape_cast %185 : vector<1x1x256xf32> to vector<1x256xf32>
    %c0_55 = arith.constant 0 : index
    %c2_56 = arith.constant 2 : index
    %c0_57 = arith.constant 0 : index
    %187 = vector.load %arg4[%c0_55, %c2_56, %c0_57] : memref<1x16x256xf32, #tpu.memory_space<vmem>>, vector<1x1x256xf32>
    %188 = vector.shape_cast %187 : vector<1x1x256xf32> to vector<1x256xf32>
    %189 = vector.shape_cast %186 : vector<1x256xf32> to vector<1x1x256xf32>
    tpu.vector_store %arg4[%c0_55, %c2_56, %c0_57], %189 {strides = array<i32>} : memref<1x16x256xf32, #tpu.memory_space<vmem>>, vector<1x1x256xf32>,
    %190 = vector.extract_strided_slice %174 {offsets = [0, 1, 0], sizes = [1, 1, 256], strides = [1, 1, 1]} : vector<1x8x256xf32> to vector<1x1x256xf32>
    %191 = vector.shape_cast %190 : vector<1x1x256xf32> to vector<1x256xf32>
    %c0_58 = arith.constant 0 : index
    %c3_59 = arith.constant 3 : index
    %c0_60 = arith.constant 0 : index
    %192 = vector.load %arg4[%c0_58, %c3_59, %c0_60] : memref<1x16x256xf32, #tpu.memory_space<vmem>>, vector<1x1x256xf32>
    %193 = vector.shape_cast %192 : vector<1x1x256xf32> to vector<1x256xf32>
    %194 = vector.shape_cast %191 : vector<1x256xf32> to vector<1x1x256xf32>
    tpu.vector_store %arg4[%c0_58, %c3_59, %c0_60], %194 {strides = array<i32>} : memref<1x16x256xf32, #tpu.memory_space<vmem>>, vector<1x1x256xf32>,
    %195 = vector.extract_strided_slice %0 {offsets = [0, 2, 0], sizes = [1, 1, 256], strides = [1, 1, 1]} : vector<1x16x256xf32> to vector<1x1x256xf32>
    %196 = vector.shape_cast %195 : vector<1x1x256xf32> to vector<1x256xf32>
    %c0_61 = arith.constant 0 : index
    %c4_62 = arith.constant 4 : index
    %c0_63 = arith.constant 0 : index
    %197 = vector.load %arg4[%c0_61, %c4_62, %c0_63] : memref<1x16x256xf32, #tpu.memory_space<vmem>>, vector<1x1x256xf32>
    %198 = vector.shape_cast %197 : vector<1x1x256xf32> to vector<1x256xf32>
    %199 = vector.shape_cast %196 : vector<1x256xf32> to vector<1x1x256xf32>
    tpu.vector_store %arg4[%c0_61, %c4_62, %c0_63], %199 {strides = array<i32>} : memref<1x16x256xf32, #tpu.memory_space<vmem>>, vector<1x1x256xf32>,
    %200 = vector.extract_strided_slice %174 {offsets = [0, 2, 0], sizes = [1, 1, 256], strides = [1, 1, 1]} : vector<1x8x256xf32> to vector<1x1x256xf32>
    %201 = vector.shape_cast %200 : vector<1x1x256xf32> to vector<1x256xf32>
    %c0_64 = arith.constant 0 : index
    %c5_65 = arith.constant 5 : index
    %c0_66 = arith.constant 0 : index
    %202 = vector.load %arg4[%c0_64, %c5_65, %c0_66] : memref<1x16x256xf32, #tpu.memory_space<vmem>>, vector<1x1x256xf32>
    %203 = vector.shape_cast %202 : vector<1x1x256xf32> to vector<1x256xf32>
    %204 = vector.shape_cast %201 : vector<1x256xf32> to vector<1x1x256xf32>
    tpu.vector_store %arg4[%c0_64, %c5_65, %c0_66], %204 {strides = array<i32>} : memref<1x16x256xf32, #tpu.memory_space<vmem>>, vector<1x1x256xf32>,
    %205 = vector.extract_strided_slice %0 {offsets = [0, 3, 0], sizes = [1, 1, 256], strides = [1, 1, 1]} : vector<1x16x256xf32> to vector<1x1x256xf32>
    %206 = vector.shape_cast %205 : vector<1x1x256xf32> to vector<1x256xf32>
    %c0_67 = arith.constant 0 : index
    %c6_68 = arith.constant 6 : index
    %c0_69 = arith.constant 0 : index
    %207 = vector.load %arg4[%c0_67, %c6_68, %c0_69] : memref<1x16x256xf32, #tpu.memory_space<vmem>>, vector<1x1x256xf32>
    %208 = vector.shape_cast %207 : vector<1x1x256xf32> to vector<1x256xf32>
    %209 = vector.shape_cast %206 : vector<1x256xf32> to vector<1x1x256xf32>
    tpu.vector_store %arg4[%c0_67, %c6_68, %c0_69], %209 {strides = array<i32>} : memref<1x16x256xf32, #tpu.memory_space<vmem>>, vector<1x1x256xf32>,
    %210 = vector.extract_strided_slice %174 {offsets = [0, 3, 0], sizes = [1, 1, 256], strides = [1, 1, 1]} : vector<1x8x256xf32> to vector<1x1x256xf32>
    %211 = vector.shape_cast %210 : vector<1x1x256xf32> to vector<1x256xf32>
    %c0_70 = arith.constant 0 : index
    %c7_71 = arith.constant 7 : index
    %c0_72 = arith.constant 0 : index
    %212 = vector.load %arg4[%c0_70, %c7_71, %c0_72] : memref<1x16x256xf32, #tpu.memory_space<vmem>>, vector<1x1x256xf32>
    %213 = vector.shape_cast %212 : vector<1x1x256xf32> to vector<1x256xf32>
    %214 = vector.shape_cast %211 : vector<1x256xf32> to vector<1x1x256xf32>
    tpu.vector_store %arg4[%c0_70, %c7_71, %c0_72], %214 {strides = array<i32>} : memref<1x16x256xf32, #tpu.memory_space<vmem>>, vector<1x1x256xf32>,
    %215 = vector.extract_strided_slice %0 {offsets = [0, 4, 0], sizes = [1, 1, 256], strides = [1, 1, 1]} : vector<1x16x256xf32> to vector<1x1x256xf32>
    %216 = vector.shape_cast %215 : vector<1x1x256xf32> to vector<1x256xf32>
    %c0_73 = arith.constant 0 : index
    %c8_74 = arith.constant 8 : index
    %c0_75 = arith.constant 0 : index
    %217 = vector.load %arg4[%c0_73, %c8_74, %c0_75] : memref<1x16x256xf32, #tpu.memory_space<vmem>>, vector<1x1x256xf32>
    %218 = vector.shape_cast %217 : vector<1x1x256xf32> to vector<1x256xf32>
    %219 = vector.shape_cast %216 : vector<1x256xf32> to vector<1x1x256xf32>
    tpu.vector_store %arg4[%c0_73, %c8_74, %c0_75], %219 {strides = array<i32>} : memref<1x16x256xf32, #tpu.memory_space<vmem>>, vector<1x1x256xf32>,
    %220 = vector.extract_strided_slice %174 {offsets = [0, 4, 0], sizes = [1, 1, 256], strides = [1, 1, 1]} : vector<1x8x256xf32> to vector<1x1x256xf32>
    %221 = vector.shape_cast %220 : vector<1x1x256xf32> to vector<1x256xf32>
    %c0_76 = arith.constant 0 : index
    %c9_77 = arith.constant 9 : index
    %c0_78 = arith.constant 0 : index
    %222 = vector.load %arg4[%c0_76, %c9_77, %c0_78] : memref<1x16x256xf32, #tpu.memory_space<vmem>>, vector<1x1x256xf32>
    %223 = vector.shape_cast %222 : vector<1x1x256xf32> to vector<1x256xf32>
    %224 = vector.shape_cast %221 : vector<1x256xf32> to vector<1x1x256xf32>
    tpu.vector_store %arg4[%c0_76, %c9_77, %c0_78], %224 {strides = array<i32>} : memref<1x16x256xf32, #tpu.memory_space<vmem>>, vector<1x1x256xf32>,
    %225 = vector.extract_strided_slice %0 {offsets = [0, 5, 0], sizes = [1, 1, 256], strides = [1, 1, 1]} : vector<1x16x256xf32> to vector<1x1x256xf32>
    %226 = vector.shape_cast %225 : vector<1x1x256xf32> to vector<1x256xf32>
    %c0_79 = arith.constant 0 : index
    %c10_80 = arith.constant 10 : index
    %c0_81 = arith.constant 0 : index
    %227 = vector.load %arg4[%c0_79, %c10_80, %c0_81] : memref<1x16x256xf32, #tpu.memory_space<vmem>>, vector<1x1x256xf32>
    %228 = vector.shape_cast %227 : vector<1x1x256xf32> to vector<1x256xf32>
    %229 = vector.shape_cast %226 : vector<1x256xf32> to vector<1x1x256xf32>
    tpu.vector_store %arg4[%c0_79, %c10_80, %c0_81], %229 {strides = array<i32>} : memref<1x16x256xf32, #tpu.memory_space<vmem>>, vector<1x1x256xf32>,
    %230 = vector.extract_strided_slice %174 {offsets = [0, 5, 0], sizes = [1, 1, 256], strides = [1, 1, 1]} : vector<1x8x256xf32> to vector<1x1x256xf32>
    %231 = vector.shape_cast %230 : vector<1x1x256xf32> to vector<1x256xf32>
    %c0_82 = arith.constant 0 : index
    %c11_83 = arith.constant 11 : index
    %c0_84 = arith.constant 0 : index
    %232 = vector.load %arg4[%c0_82, %c11_83, %c0_84] : memref<1x16x256xf32, #tpu.memory_space<vmem>>, vector<1x1x256xf32>
    %233 = vector.shape_cast %232 : vector<1x1x256xf32> to vector<1x256xf32>
    %234 = vector.shape_cast %231 : vector<1x256xf32> to vector<1x1x256xf32>
    tpu.vector_store %arg4[%c0_82, %c11_83, %c0_84], %234 {strides = array<i32>} : memref<1x16x256xf32, #tpu.memory_space<vmem>>, vector<1x1x256xf32>,
    %235 = vector.extract_strided_slice %0 {offsets = [0, 6, 0], sizes = [1, 1, 256], strides = [1, 1, 1]} : vector<1x16x256xf32> to vector<1x1x256xf32>
    %236 = vector.shape_cast %235 : vector<1x1x256xf32> to vector<1x256xf32>
    %c0_85 = arith.constant 0 : index
    %c12_86 = arith.constant 12 : index
    %c0_87 = arith.constant 0 : index
    %237 = vector.load %arg4[%c0_85, %c12_86, %c0_87] : memref<1x16x256xf32, #tpu.memory_space<vmem>>, vector<1x1x256xf32>
    %238 = vector.shape_cast %237 : vector<1x1x256xf32> to vector<1x256xf32>
    %239 = vector.shape_cast %236 : vector<1x256xf32> to vector<1x1x256xf32>
    tpu.vector_store %arg4[%c0_85, %c12_86, %c0_87], %239 {strides = array<i32>} : memref<1x16x256xf32, #tpu.memory_space<vmem>>, vector<1x1x256xf32>,
    %240 = vector.extract_strided_slice %174 {offsets = [0, 6, 0], sizes = [1, 1, 256], strides = [1, 1, 1]} : vector<1x8x256xf32> to vector<1x1x256xf32>
    %241 = vector.shape_cast %240 : vector<1x1x256xf32> to vector<1x256xf32>
    %c0_88 = arith.constant 0 : index
    %c13_89 = arith.constant 13 : index
    %c0_90 = arith.constant 0 : index
    %242 = vector.load %arg4[%c0_88, %c13_89, %c0_90] : memref<1x16x256xf32, #tpu.memory_space<vmem>>, vector<1x1x256xf32>
    %243 = vector.shape_cast %242 : vector<1x1x256xf32> to vector<1x256xf32>
    %244 = vector.shape_cast %241 : vector<1x256xf32> to vector<1x1x256xf32>
    tpu.vector_store %arg4[%c0_88, %c13_89, %c0_90], %244 {strides = array<i32>} : memref<1x16x256xf32, #tpu.memory_space<vmem>>, vector<1x1x256xf32>,
    %245 = vector.extract_strided_slice %0 {offsets = [0, 7, 0], sizes = [1, 1, 256], strides = [1, 1, 1]} : vector<1x16x256xf32> to vector<1x1x256xf32>
    %246 = vector.shape_cast %245 : vector<1x1x256xf32> to vector<1x256xf32>
    %c0_91 = arith.constant 0 : index
    %c14_92 = arith.constant 14 : index
    %c0_93 = arith.constant 0 : index
    %247 = vector.load %arg4[%c0_91, %c14_92, %c0_93] : memref<1x16x256xf32, #tpu.memory_space<vmem>>, vector<1x1x256xf32>
    %248 = vector.shape_cast %247 : vector<1x1x256xf32> to vector<1x256xf32>
    %249 = vector.shape_cast %246 : vector<1x256xf32> to vector<1x1x256xf32>
    tpu.vector_store %arg4[%c0_91, %c14_92, %c0_93], %249 {strides = array<i32>} : memref<1x16x256xf32, #tpu.memory_space<vmem>>, vector<1x1x256xf32>,
    %250 = vector.extract_strided_slice %174 {offsets = [0, 7, 0], sizes = [1, 1, 256], strides = [1, 1, 1]} : vector<1x8x256xf32> to vector<1x1x256xf32>
    %251 = vector.shape_cast %250 : vector<1x1x256xf32> to vector<1x256xf32>
    %c0_94 = arith.constant 0 : index
    %c15_95 = arith.constant 15 : index
    %c0_96 = arith.constant 0 : index
    %252 = vector.load %arg4[%c0_94, %c15_95, %c0_96] : memref<1x16x256xf32, #tpu.memory_space<vmem>>, vector<1x1x256xf32>
    %253 = vector.shape_cast %252 : vector<1x1x256xf32> to vector<1x256xf32>
    %254 = vector.shape_cast %251 : vector<1x256xf32> to vector<1x1x256xf32>
    tpu.vector_store %arg4[%c0_94, %c15_95, %c0_96], %254 {strides = array<i32>} : memref<1x16x256xf32, #tpu.memory_space<vmem>>, vector<1x1x256xf32>,
    return
  }
  func.func @transform_0(%arg0: i32) -> (i32, i32, i32) {
    %c0_i32 = arith.constant 0 : i32
    %c0_i32_0 = arith.constant 0 : i32
    %c0_i32_1 = arith.constant 0 : i32
    return %arg0, %c0_i32, %c0_i32_0 : i32, i32, i32
  }
  func.func @transform_1(%arg0: i32) -> (i32, i32) {
    %c0_i32 = arith.constant 0 : i32
    %c0_i32_0 = arith.constant 0 : i32
    %c0_i32_1 = arith.constant 0 : i32
    return %c0_i32, %c0_i32_0 : i32, i32
  }
  func.func @transform_2(%arg0: i32) -> (i32, i32, i32) {
    %c0_i32 = arith.constant 0 : i32
    %c0_i32_0 = arith.constant 0 : i32
    %c0_i32_1 = arith.constant 0 : i32
    %c0_i32_2 = arith.constant 0 : i32
    return %c0_i32, %c0_i32_0, %c0_i32_1 : i32, i32, i32
  }
  func.func @transform_3(%arg0: i32) -> (i32, i32, i32) {
    %c0_i32 = arith.constant 0 : i32
    %c0_i32_0 = arith.constant 0 : i32
    %c0_i32_1 = arith.constant 0 : i32
    return %arg0, %c0_i32, %c0_i32_0 : i32, i32, i32
  }
}

</mosaic_0001>

<bundles_post_ra>
// kernel: tpu_custom_call.1
= control target key start
LH: loop header
LB: loop body
LE: loop exit
PB: predicated region body
PF: predicated region fallthrough
CT: control target
= control target key end

     0   :  { %8 = vsyncpa [#allocation3], 0  ;;  %s1700_s0 = inlined_call_operand.hbm [shape: f32[2,16,256], index: 0, kind: input, shape index: {}]   ;;  %s1701_s1 = inlined_call_operand.hbm [shape: f32[8,18], index: 1, kind: input, shape index: {}]   ;;  %s1702_s2 = inlined_call_operand.hbm [shape: f32[9,8,256], index: 2, kind: input, shape index: {}]   ;;  %s1703_s3 = inlined_call_operand.hbm [shape: f32[2,16,256], index: 3, kind: output, shape index: {}]  }
   0x1   :  { %10 = vsyncpa [#allocation3 + $0x1], 0 }
   0x2   :  { %11 = vsyncpa [#allocation6], 0 }
   0x3   :  { %12 = vsyncpa [#allocation4], 0 }
   0x4   :  { %14 = vsyncpa [#allocation4 + $0x1], 0  ;;  %s1250_s12 = smov 0   ;;  %s1252_s13 = smov 0  }
   0x5   :  { %s1254_s14 = smov 0   ;;  %s1256_s15 = smov 0  }
   0x6 LB: > { %s1271_s16 = sadd.s32 4294967295, %s1194_s15   ;;  %s885_s17 = sadd.s32 4294967294, %s1194_s15   ;;  %s1194_s15 = sphi %s1256_s15, %s1730_s15   ;;  %s1190_s14 = sphi %s1254_s14, %s1729_s14   ;;  %s1186_s13 = sphi %s1252_s13, %s1728_s13   ;;  %s1182_s12 = sphi %s1250_s12, %s1727_s12  }
   0x7   : > { %s1275_s18 = sadd.s32 1, %s1194_s15   ;;  %s27_s19 = sadd.s32 1, %s1190_s14 }
   0x8   : > { %s24_s20 = ssub.s32 %s1194_s15, %s1275_s18  ;;  %p34_p0 = scmp.ne.s32.totalorder %s1190_s14, %s1186_s13 }
   0x9   : > { %p25_p1 = scmp.eq.s32.totalorder %s24_s20, 0  ;;  %p35_p2 = scmp.eq.s32.totalorder %s1194_s15, 0 }
   0xa   : > { %p40_p3 = scmp.ne.s32.totalorder %s1186_s13, %s1182_s12  ;;  %p1704_p4 = scmp.eq.s32.totalorder %s1271_s16, 0 }
   0xb   : > { %s1287_s21 = scalar_select %p25_p1, %s1190_s14, %s27_s19  }
   0xc   : > { %p1289_p5 = por %p35_p2, %p34_p0  ;;  %p1295_p6 = por %p1704_p4, %p40_p3 }
   0xd   : > { %p106_p7 = scmp.eq.s32.totalorder %s1271_s16, 1  ;;  %p112_p8 = scmp.eq.s32.totalorder %s885_s17, 1 }
   0xe   : > { %s1710_s23 = scalar_select %p1295_p6, 1, 0 }
   0xf   : > { %p886_p9 = scmp.ge.s32.totalorder %s1194_s15, 1  ;;  %p119_p10 = scmp.lt.s32.totalorder %s1194_s15, 3 }
  0x10   : > { %p1302_p11 = por %p106_p7, %p34_p0  ;;  %p1306_p12 = por %p112_p8, %p40_p3 }
  0x11   : > { %p1310_p13 = pnand %p886_p9, %p119_p10  ;;  %s1196_s27 = smov [#allocation5]  }
  0x12   : > { %s1711_s24 = scalar_select %p1302_p11, 1, 0 }
  0x13   : > { %s1712_s25 = scalar_select %p1306_p12, 1, 0 }
  0x14   : > { %s1713_s26 = scalar_select %p1310_p13, 1, 0 }
  0x15   : > { %p932_p2 = pneg %p1310_p13  ;;  %s132_s28 = sshll.u32 %s1196_s27, 4  ;;  %s133_s28 = int_to_ptr.vmem [resolvable:$true] %s132_s28 }
  0x16   : > { %p949_p4 = scmp.lt.s32.totalorder %s1194_s15, 2  ;;  %p1714_p0 = scmp.eq.s32.totalorder %s1271_s16, 0 }
  0x17   : > { %s1197_s4 = smov [#allocation7]   ;;  %s1038_s8 = scalar_lea.hbm %s1701_s1, 128 }
  0x18   : > { %p1320_p7 = pnand %p932_p2, %p1714_p0  ;;  %p1326_p3 = pnand %p949_p4, %p1289_p5 }
  0x19   : > { %s142_s5 = sshll.u32 %s1197_s4, 4  ;;  %p1039_p8 = scmp.ne.s32.totalorder %s1701_s1, %s1038_s8  ;;  %s1330_s5 = int_to_ptr.vmem [resolvable:$true] %s142_s5 }
  0x1a   : > { %s1716_s30 = scalar_select %p1326_p3, 1, 0 }
  0x1b   : > { %p1040_p9 = pneg %p1320_p7  ;;  %p1045_p10 = scmp.lt.u32.totalorder %s1038_s8, %s1701_s1 }
  0x1d   : > { %p1041_p4 = pnand %p1040_p9, %p1039_p8 }
  0x1f   : > { %p1042_p5 = pneg %p1041_p4 }
  0x21   : > { %p1047_p2 = pnand %p1045_p10, %p1042_p5 }
  0x23   : > { %1050 = shalt.err (!%p1047_p2)
}
  0x24   : > { %s1051_s19 = scalar_lea.vmem %s133_s28, 128  ;;  %p1059_p11 = scmp.lt.s32.totalorder %s133_s28, %s133_s28 }
  0x25   : > { %p1052_p0 = scmp.ne.s32.totalorder %s133_s28, %s1051_s19  ;;  %p1060_p6 = scmp.lt.s32.totalorder %s1051_s19, %s1051_s19 }
  0x27   : > { %p1054_p1 = pnand %p1052_p0, %p1040_p9  ;;  %p1061_p13 = por %p1060_p6, %p1059_p11 }
  0x29   : > { %p1055_p12 = pneg %p1054_p1 }
  0x2b   : > { %p1062_p3 = pnand %p1061_p13, %p1055_p12 }
  0x2d   : > { %1065 = shalt.err (!%p1062_p3)
}
  0x2e   : > { %935 = dma.hbm_to_vmem [thread:$0]  (!%p1320_p7), %s1701_s1, 128, %s133_s28, [#allocation6]  }
  0x2f   : > { %s156_s27 = sand.u32 1, %s1190_s14   ;;  %s1066_s7 = scalar_lea.hbm %s1702_s2, 2304 }
  0x30   : > { %p1067_p1 = scmp.ne.s32.totalorder %s1702_s2, %s1066_s7  ;;  %p1073_p12 = scmp.lt.u32.totalorder %s1066_s7, %s1702_s2 }
  0x32   : > { %p1069_p6 = pnand %p1067_p1, %p1040_p9 }
  0x34   : > { %p1070_p11 = pneg %p1069_p6 }
  0x36   : > { %p1075_p13 = pnand %p1073_p12, %p1070_p11 }
  0x38   : > { %1078 = shalt.err (!%p1075_p13)
}
  0x39   : > { %s1079_s28 = scalar_lea.vmem %s1330_s5, 2304  ;;  %p1087_p5 = scmp.lt.s32.totalorder %s1330_s5, %s1330_s5 }
  0x3a   : > { %p1080_p3 = scmp.ne.s32.totalorder %s1330_s5, %s1079_s28  ;;  %p1088_p10 = scmp.lt.s32.totalorder %s1079_s28, %s1079_s28 }
  0x3c   : > { %p1082_p8 = pnand %p1080_p3, %p1040_p9  ;;  %p1089_p2 = por %p1088_p10, %p1087_p5 }
  0x3e   : > { %p1083_p4 = pneg %p1082_p8 }
  0x40   : > { %p1090_p0 = pnand %p1089_p2, %p1083_p4 }
  0x42   : > { %1093 = shalt.err (!%p1090_p0)
}
  0x43   : > { %s1198_s17 = smov 256   ;;  %s1199_s19 = smov 16  }
  0x44   : > { %938 = dma.hbm_to_vmem [thread:$0]  (!%p1320_p7), %s1702_s2, 2304, %s1330_s5, [#allocation6], %s1198_s17, %s1198_s17, %s1199_s19  }
  0x45   : > { %s890_s4 = sshll.u32 %s156_s27, 5  ;;  %s918_s6 = sshll.u32 %s1194_s15, 9 }
  0x46   : > { %s1387_s9 = scalar_lea.hbm %s1700_s0, %s918_s6  ;;  %s160_s10 = scalar_lea.vmem [#allocation2], %s890_s4 }
  0x47   : > { %s167_s29 = sshll.u32 %s160_s10, 4  ;;  %s1391_s11 = scalar_lea.sflag [#allocation3], %s156_s27  ;;  %s1389_s29 = int_to_ptr.vmem [resolvable:$true] %s167_s29 }
  0x48   : > { %s1094_s28 = scalar_lea.hbm %s1387_s9, 512  ;;  %p1717_p7 = scmp.ne.s32.totalorder %s1716_s30, 0 }
  0x49   : > { %p1095_p9 = scmp.ne.s32.totalorder %s1387_s9, %s1094_s28  ;;  %s1099_s22 = scalar_lea.hbm %s1700_s0, 1024 }
  0x4a   : > { %p1096_p1 = pneg %p1717_p7  ;;  %p1100_p12 = scmp.lt.u32.totalorder %s1387_s9, %s1700_s0 }
  0x4b   : > { %p1101_p13 = scmp.lt.u32.totalorder %s1099_s22, %s1094_s28  ;;  %p1103_p8 = scmp.lt.u32.totalorder %s1094_s28, %s1387_s9 }
  0x4c   : > { %p1097_p6 = pnand %p1096_p1, %p1095_p9 }
  0x4d   : > { %p1102_p3 = por %p1101_p13, %p1100_p12 }
  0x4e   : > { %p1098_p11 = pneg %p1097_p6 }
  0x4f   : > { %p1104_p4 = por %p1103_p8, %p1102_p3 }
  0x51   : > { %p1105_p5 = pnand %p1104_p4, %p1098_p11 }
  0x53   : > { %1108 = shalt.err (!%p1105_p5)
}
  0x54   : > { %s1109_s27 = scalar_lea.vmem %s1389_s29, 512  ;;  %s1200_s4 = smov [#allocation2]  }
  0x55   : > { %p1110_p10 = scmp.ne.s32.totalorder %s1389_s29, %s1109_s27  ;;  %s1114_s8 = sshll.u32 %s1200_s4, 4  ;;  %s1115_s8 = int_to_ptr.vmem [resolvable:$false] %s1114_s8 }
  0x56   : > { %s1116_s10 = scalar_lea.vmem %s1115_s8, 1024  ;;  %p1117_p9 = scmp.lt.s32.totalorder %s1389_s29, %s1115_s8 }
  0x57   : > { %p1112_p2 = pnand %p1110_p10, %p1096_p1  ;;  %p1118_p6 = scmp.lt.s32.totalorder %s1116_s10, %s1109_s27 }
  0x59   : > { %p1113_p0 = pneg %p1112_p2  ;;  %p1119_p12 = por %p1118_p6, %p1117_p9 }
  0x5b   : > { %p1120_p13 = pnand %p1119_p12, %p1113_p0 }
  0x5d   : > { %1123 = shalt.err (!%p1120_p13)
}
  0x5e   : > { %942 = dma.hbm_to_vmem [thread:$0]  (!%p1717_p7), %s1387_s9, 512, %s1389_s29, %s1391_s11, %s1198_s17, %s1198_s17, %s1199_s19  }
  0x5f   : > { %p1718_p1 = scmp.ne.s32.totalorder %s1713_s26, 0 }
  0x60   : > { %s1425_s28 = sand.u32 (!%p1718_p1), 1, %s1186_s13   ;;  %p1719_p11 = scmp.ne.s32.totalorder (!%p1718_p1), %s1710_s23, 0 }
  0x61   : > { %179 = sbr.rel (%p1718_p1) target bundleno = 474 (0x1da), region = 32  ;;  %s894_s5 = sshll.u32 (!%p1718_p1), %s1425_s28, 5 }
  0x62   : > { %s182_s20 = scalar_lea.sflag (!%p1718_p1), [#allocation3], %s1425_s28  ;;  %s1431_s30 = scalar_lea.vmem (!%p1718_p1), [#allocation2], %s894_s5 }
  0x68   : > { %1169 = dma.done.wait (%p1719_p11), %s182_s20, 512  }
  0x69   : > { %1171 = vsyncadd (%p1719_p11), %s182_s20, 4294966784  ;;  %p1720_p7 = scmp.eq.s32.totalorder %s1271_s16, 0 }
  0x6b   : > { %1173 = dma.done.wait (%p1720_p7), [#allocation6], 2432   ;;  %p1721_p3 = pmov %p1720_p7 }
  0x6c   : > { %v1201_v0 = vmov 2   ;;  %v1202_v1 = vmov 0   ;;  %v1441_v2 = vld [vmem:[#allocation5] sm:$0xff]  ;;  %v1203_v3 = vmov 3   ;;  %v1204_v4 = vmov 1   ;;  %v218_v22 = vld [vmem:[%s1431_s30 + $0x10] sm:$0xff] }
  0x6d   : > { %1175 = vsyncadd (%p1721_p3), [#allocation6], 4294964864  ;;  %1019 = vset.pattern.permute.xlu1 %v1201_v0  ;;  %1017 = vset.pattern.permute.xlu0 %v1202_v1  ;;  %v1205_v5 = vmov 4   ;;  %v1206_v6 = vmov 5   ;;  %v1207_v7 = vmov 6   ;;  %v1208_v8 = vmov 16  }
  0x6e   : > { %261 = vperm.xlu1 %1019, %v1441_v2   ;;  %231 = vperm.xlu0 %1017, %v1441_v2   ;;  %v1209_v9 = vmov 7   ;;  %v1210_v10 = vmov 8   ;;  %v1211_v11 = vmov 9   ;;  %v1212_v12 = vmov 10   ;;  %v219_v23 = vld [vmem:[%s1431_s30 + $0x18] sm:$0xff]  ;;  %s1215_s23 = smov 16  }
  0x6f   : > { %v1213_v13 = vmov 11   ;;  %v1214_v14 = vmov 12   ;;  %v221_v15 = vlaneseq  ;;  %s1216_s26 = smov 17   ;;  %s1217_s17 = smov 15  }
  0x70   : > { %s1218_s19 = smov 1   ;;  %s1219_s9 = smov 127  }
  0x71   : > { %v1456_v16 = vshrl.u32 %v221_v15, 7  ;;  %s1220_s29 = smov 113   ;;  %s1221_s11 = smov 112   ;;  %vm1539_vm0 = vcmp.lt.s32.totalorder %v221_v15, 256 }
  0x72   : > { %1020 = vset.pattern.permute.xlu1 %v1203_v3  ;;  %1018 = vset.pattern.permute.xlu0 %v1204_v4  ;;  %s1222_s22 = smov 111   ;;  %s1545_s6 = scalar_lea.vmem [#allocation8], %s894_s5 }
  0x73   : > { %277 = vperm.xlu1 %1020, %v1441_v2   ;;  %245 = vperm.xlu0 %1018, %v1441_v2   ;;  %v1459_v17 = vsub.s32 0, %v1456_v16  ;;  %v1462_v18 = vsub.s32 1, %v1456_v16  ;;  %v1465_v19 = vsub.s32 2, %v1456_v16  ;;  %v1470_v24 = vsub.s32 3, %v1456_v16  ;;  %s919_s7 = sshll.u32 %s1271_s16, 9  ;;  %s793_s27 = sshll.u32 %s1545_s6, 4  ;;  %s1649_s27 = int_to_ptr.vmem [resolvable:$true] %s793_s27 }
  0x74   : > { %v1477_v29 = vsub.s32 4, %v1456_v16  ;;  %v1484_v36 = vsub.s32 5, %v1456_v16  ;;  %v1491_v49 = vsub.s32 6, %v1456_v16  ;;  %v1494_v60 = vsub.s32 7, %v1456_v16  ;;  %s1635_s16 = scalar_lea.hbm %s1703_s3, %s919_s7  ;;  %s780_s10 = scalar_lea.sflag [#allocation4], %s1425_s28 }
  0x75   : > { %v224_v25 = vrot.slane %v218_v22, %v1459_v17  ;;  %v228_v26 = vrot.slane %v219_v23, %v1459_v17  ;;  %v239_v27 = vrot.slane %v218_v22, %v1462_v18  ;;  %v243_v28 = vrot.slane %v219_v23, %v1462_v18  ;;  %s1124_s5 = scalar_lea.vmem %s1649_s27, 512  ;;  %p1724_p4 = scmp.ne.s32.totalorder %s1711_s24, 0 }
  0x76   : > { %v255_v30 = vrot.slane %v218_v22, %v1465_v19  ;;  %v259_v31 = vrot.slane %v219_v23, %v1465_v19  ;;  %v271_v33 = vrot.slane %v218_v22, %v1470_v24  ;;  %v275_v34 = vrot.slane %v219_v23, %v1470_v24  ;;  %p1125_p8 = scmp.ne.s32.totalorder %s1649_s27, %s1124_s5  ;;  %s1228_s20 = smov [#allocation8]  }
  0x77   : > { %1021 = vset.pattern.permute.xlu1 %v1205_v5  ;;  %1022 = vset.pattern.permute.xlu0 %v1206_v6  ;;  %v287_v41 = vrot.slane %v218_v22, %v1477_v29  ;;  %v291_v42 = vrot.slane %v219_v23, %v1477_v29  ;;  %v303_v47 = vrot.slane %v218_v22, %v1484_v36 }
  0x78   : > { %293 = vperm.xlu1 %1021, %v1441_v2   ;;  %309 = vperm.xlu0 %1022, %v1441_v2   ;;  %v307_v48 = vrot.slane %v219_v23, %v1484_v36  ;;  %v319_v63 = vrot.slane %v218_v22, %v1491_v49  ;;  %v323_v0 = vrot.slane %v219_v23, %v1491_v49  ;;  %p1126_p5 = pnand %p1125_p8, %p1724_p4 }
  0x79   : > { %v335_v5 = vrot.slane %v218_v22, %v1494_v60  ;;  %v339_v6 = vrot.slane %v219_v23, %v1494_v60  ;;  %v1223_v23 = vmov 14  }
  0x7a   : > { %p1127_p10 = pneg %p1126_p5 }
  0x7c   : > { %1023 = vset.pattern.permute.xlu1 %v1207_v7  ;;  %1025 = vset.pattern.permute.xlu0 %v1208_v8 }
  0x7d   : > { %325 = vperm.xlu1 %1023, %v1441_v2   ;;  %349 = vperm.xlu0 %1025, %v1441_v2  }
  0x81   : > { %1024 = vset.pattern.permute.xlu1 %v1209_v9  ;;  %1026 = vset.pattern.permute.xlu0 %v1210_v10 }
  0x82   : > { %341 = vperm.xlu1 %1024, %v1441_v2   ;;  %483 = vperm.xlu0 %1026, %v1441_v2  }
  0x86   : > { %1027 = vset.pattern.permute.xlu1 %v1211_v11  ;;  %1029 = vset.pattern.permute.xlu0 %v1213_v13 }
  0x87   : > { %497 = vperm.xlu1 %1027, %v1441_v2  }
  0x8b   : > { %1028 = vset.pattern.permute.xlu1 %v1212_v12 }
  0x8c   : > { %513 = vperm.xlu1 %1028, %v1441_v2  }
  0x90   : > { %1030 = vset.pattern.permute.xlu1 %v1214_v14 }
  0xed   : > { %v262_v20 = vpop.permute.xlu1 %261  ;;  %v232_v21 = vpop.permute.xlu0 %231 }
  0xee   : > { %v234_v37 = vmul.f32 %v232_v21, %v224_v25  ;;  %v235_v38 = vmul.f32 %v232_v21, %v228_v26  ;;  %v264_v43 = vmul.f32 %v262_v20, %v255_v30  ;;  %v265_v44 = vmul.f32 %v262_v20, %v259_v31 }
  0xef   : > { %v1224_v31 = vmov 17  }
  0xf2   : > { %v278_v32 = vpop.permute.xlu1 %277  ;;  %v246_v35 = vpop.permute.xlu0 %245 }
  0xf3   : > { %v248_v39 = vmul.f32 %v246_v35, %v239_v27  ;;  %v249_v40 = vmul.f32 %v246_v35, %v243_v28  ;;  %v280_v50 = vmul.f32 %v278_v32, %v271_v33  ;;  %v281_v51 = vmul.f32 %v278_v32, %v275_v34 }
  0xf4   : > { %v1225_v32 = vmov 13   ;;  %v1226_v33 = vmov 15   ;;  %v1227_v34 = vmov 1966171168  }
  0xf5   : > { %v250_v45 = vadd.f32 %v248_v39, %v234_v37  ;;  %v251_v46 = vadd.f32 %v249_v40, %v235_v38  ;;  %v612_v35 = vunpack.c.l.s4 %v1227_v34  ;;  %v216_v39 = vld [vmem:[%s1431_s30] sm:$0xff]  ;;  %v217_v40 = vld [vmem:[%s1431_s30 + $0x8] sm:$0xff] }
  0xf7   : > { %v266_v52 = vadd.f32 %v264_v43, %v250_v45  ;;  %v267_v53 = vadd.f32 %v265_v44, %v251_v46  ;;  %v294_v54 = vpop.permute.xlu1 %293  ;;  %v310_v55 = vpop.permute.xlu0 %309  ;;  %v613_v37 = vunpack.c.0.s8 %v612_v35 }
  0xf8   : > { %v296_v56 = vmul.f32 %v294_v54, %v287_v41  ;;  %v297_v57 = vmul.f32 %v294_v54, %v291_v42  ;;  %v312_v61 = vmul.f32 %v310_v55, %v303_v47  ;;  %v313_v62 = vmul.f32 %v310_v55, %v307_v48  ;;  %v1036_v41 = vld [vmem:[%s1431_s30] ss:$8 sps:$4 sm:$0xff]   ;;  %s1128_s30 = sshll.u32 %s1228_s20, 4  ;;  %s1129_s30 = int_to_ptr.vmem [resolvable:$false] %s1128_s30 }
  0xf9   : > { %v282_v58 = vadd.f32 %v280_v50, %v266_v52  ;;  %v283_v59 = vadd.f32 %v281_v51, %v267_v53  ;;  %v1529_v38 = vsub.s32 %v613_v37, %v1456_v16  ;;  %v697_v42 = vcombine.high %v216_v39, %v217_v40  ;;  %v412_v37 = vld [vmem:[#allocation7 + $0x30] sm:$0xff]  ;;  %v413_v39 = vld [vmem:[#allocation7 + $0x38] sm:$0xff]  ;;  %p1131_p2 = scmp.lt.s32.totalorder %s1649_s27, %s1129_s30 }
  0xfb   : > { %v298_v1 = vadd.f32 %v296_v56, %v282_v58  ;;  %v299_v3 = vadd.f32 %v297_v57, %v283_v59  ;;  %v617_v43 = vrot.slane %v1036_v41, %v1529_v38  ;;  %v704_v44 = vrot.slane %v697_v42, %v1529_v38 }
  0xfc   : > { %v326_v4 = vpop.permute.xlu1 %325  ;;  %v350_v21 = vpop.permute.xlu0 %349 }
  0xfd   : > { %v314_v7 = vadd.f32 %v312_v61, %v298_v1  ;;  %v315_v8 = vadd.f32 %v313_v62, %v299_v3  ;;  %v328_v9 = vmul.f32 %v326_v4, %v319_v63  ;;  %v329_v10 = vmul.f32 %v326_v4, %v323_v0 }
  0xfe   : > { %v624_v45 = vrot.slane %v617_v43, %v1529_v38  ;;  %v653_v46 = vcombine.high %v617_v43, %v617_v43  ;;  %v735_v47 = vcombine.high %v704_v44, %v704_v44  ;;  %v1580_v63 = vand.u32 127, %v221_v15  ;;  %v385_v15 = vld [vmem:[#allocation7 + $0x18] sm:$0xff] }
  0xff   : > { %v330_v12 = vadd.f32 %v328_v9, %v314_v7  ;;  %v331_v13 = vadd.f32 %v329_v10, %v315_v8  ;;  %v358_v9 = vld [vmem:[#allocation7 + $0x48] sm:$0xff] }
 0x100   : > { %630 = vst.msk [vmem:[%s1545_s6] ss:$8 sm:$0x3] %vm1539_vm0, %v624_v45  ;;  %v660_v16 = vrot.slane %v653_v46, %v1529_v38  ;;  %v677_v50 = vcombine.high %v624_v45, %v624_v45  ;;  %v742_v51 = vrot.slane %v735_v47, %v1529_v38  ;;  %vm367_vm1 = vcmp.lt.s32.totalorder %v1580_v63, 17  ;;  %v426_v45 = vld [vmem:[#allocation7 + $0x50] sm:$0xff]  ;;  %v427_v46 = vld [vmem:[#allocation7 + $0x58] sm:$0xff] }
 0x101   : > { %v342_v11 = vpop.permute.xlu1 %341  ;;  %v1577_v57 = vpop.permute.xlu0 %483  ;;  %vm380_vm2 = vcmp.lt.s32.totalorder %v1580_v63, 16  ;;  %vm394_vm3 = vcmp.lt.s32.totalorder %v1580_v63, 15  ;;  %vm408_vm4 = vcmp.lt.s32.totalorder %v1580_v63, 1  ;;  %vm422_vm5 = vcmp.lt.s32.totalorder %v1580_v63, 127 }
 0x102   : > { %v344_v14 = vmul.f32 %v342_v11, %v335_v5  ;;  %v345_v20 = vmul.f32 %v342_v11, %v339_v6  ;;  %899 = vst.msk [vmem:[%s1545_s6 + $0x2] ss:$8 sm:$0x3] %vm1539_vm0, %v660_v16  ;;  %901 = vst.msk [vmem:[%s1545_s6 + $0x4] ss:$8 sm:$0x3] %vm1539_vm0, %v677_v50  ;;  %v687_v53 = vcombine.high %v660_v16, %v660_v16 }
 0x103   : > { %907 = vst.msk [vmem:[%s1545_s6 + $0x12] ss:$8 sm:$0x3] %vm1539_vm0, %v742_v51  ;;  %v769_v54 = vcombine.high %v742_v51, %v742_v51  ;;  %v370_v5 = vld [vmem:[#allocation7] sm:$0xff]  ;;  %v371_v6 = vld [vmem:[#allocation7 + $0x8] sm:$0xff]  ;;  %vm436_vm6 = vcmp.lt.s32.totalorder %v1580_v63, 113 }
 0x104   : > { %v346_v25 = vadd.f32 %v344_v14, %v330_v12  ;;  %v347_v26 = vadd.f32 %v345_v20, %v331_v13  ;;  %903 = vst.msk [vmem:[%s1545_s6 + $0x6] ss:$8 sm:$0x3] %vm1539_vm0, %v687_v53  ;;  %v357_v11 = vld [vmem:[#allocation7 + $0x40] sm:$0xff]  ;;  %v384_v12 = vld [vmem:[#allocation7 + $0x10] sm:$0xff]  ;;  %vm450_vm7 = vcmp.lt.s32.totalorder %v1580_v63, 112 }
 0x105   : > { %911 = vst.msk [vmem:[%s1545_s6 + $0x16] ss:$8 sm:$0x3] %vm1539_vm0, %v769_v54  ;;  %v440_v53 = vld [vmem:[#allocation7 + $0x60] sm:$0xff]  ;;  %v441_v54 = vld [vmem:[#allocation7 + $0x68] sm:$0xff]  ;;  %vm464_vm8 = vcmp.lt.s32.totalorder %v1580_v63, 111 }
 0x106   : > { %v352_v27 = vadd.f32 %v350_v21, %v346_v25  ;;  %v353_v28 = vadd.f32 %v350_v21, %v347_v26  ;;  %v1573_v55 = vpop.permute.xlu1 %497  ;;  %v398_v26 = vld [vmem:[#allocation7 + $0x20] sm:$0xff] }
 0x108   : > { %v1500_v30 = vmax.f32 %v352_v27, 0.0  ;;  %v1505_v22 = vmax.f32 %v353_v28, 0.0  ;;  %v399_v27 = vld [vmem:[#allocation7 + $0x28] sm:$0xff] }
 0x10a   : > { %376 = vrot.lane.b32.xlu0 %v1500_v30, %s1215_s23  ;;  %361 = vrot.lane.b32.xlu1 %v1500_v30, %s1216_s26  ;;  %v360_v25 = vmul.f32 %v358_v9, %v1505_v22 }
 0x10b   : > { %v1575_v56 = vpop.permute.xlu1 %513 }
 0x10e   : > { %390 = vrot.lane.b32.xlu0 %v1500_v30, %s1217_s17  ;;  %363 = vrot.lane.b32.xlu1 %v1505_v22, %s1216_s26  ;;  %s1130_s26 = scalar_lea.vmem %s1129_s30, 1024 }
 0x10f   : > { %p1132_p0 = scmp.lt.s32.totalorder %s1130_s26, %s1124_s5 }
 0x111   : > { %p1133_p9 = por %p1132_p0, %p1131_p2 }
 0x112   : > { %404 = vrot.lane.b32.xlu0 %v1500_v30, %s1218_s19  ;;  %378 = vrot.lane.b32.xlu1 %v1505_v22, %s1215_s23 }
 0x113   : > { %p1134_p6 = pnand %p1133_p9, %p1127_p10 }
 0x116   : > { %418 = vrot.lane.b32.xlu0 %v1500_v30, %s1219_s9  ;;  %392 = vrot.lane.b32.xlu1 %v1505_v22, %s1217_s17 }
 0x11a   : > { %432 = vrot.lane.b32.xlu0 %v1500_v30, %s1220_s29  ;;  %406 = vrot.lane.b32.xlu1 %v1505_v22, %s1218_s19 }
 0x11e   : > { %446 = vrot.lane.b32.xlu0 %v1500_v30, %s1221_s11  ;;  %420 = vrot.lane.b32.xlu1 %v1505_v22, %s1219_s9 }
 0x122   : > { %460 = vrot.lane.b32.xlu0 %v1500_v30, %s1222_s22  ;;  %434 = vrot.lane.b32.xlu1 %v1505_v22, %s1220_s29 }
 0x126   : > { %529 = vperm.xlu0 %1029, %v1441_v2   ;;  %448 = vrot.lane.b32.xlu1 %v1505_v22, %s1221_s11 }
 0x12a   : > { %1032 = vset.pattern.permute.xlu0 %v1223_v23  ;;  %462 = vrot.lane.b32.xlu1 %v1505_v22, %s1222_s22 }
 0x12b   : > { %577 = vperm.xlu0 %1032, %v1441_v2  }
 0x12e   : > { %545 = vperm.xlu1 %1030, %v1441_v2  }
 0x12f   : > { %1035 = vset.pattern.permute.xlu0 %v1224_v31 }
 0x132   : > { %1031 = vset.pattern.permute.xlu1 %v1225_v32 }
 0x133   : > { %561 = vperm.xlu1 %1031, %v1441_v2  }
 0x137   : > { %1033 = vset.pattern.permute.xlu1 %v1226_v33 }
 0x138   : > { %593 = vperm.xlu1 %1033, %v1441_v2  }
 0x13c   : > { %1034 = vset.pattern.permute.xlu1 %v1224_v31  ;;  %v359_v31 = vmul.f32 %v357_v11, %v1500_v30 }
 0x13d   : > { %601 = vperm.xlu1 %1034, %v1441_v2   ;;  %v711_v2 = vrot.slane %v704_v44, %v1529_v38 }
 0x13f   : > { %905 = vst.msk [vmem:[%s1545_s6 + $0x10] ss:$8 sm:$0x3] %vm1539_vm0, %v711_v2  ;;  %v759_v52 = vcombine.high %v711_v2, %v711_v2 }
 0x141   : > { %909 = vst.msk [vmem:[%s1545_s6 + $0x14] ss:$8 sm:$0x3] %vm1539_vm0, %v759_v52 }
 0x17c   : > { %v377_v58 = vpop.permute.xlu0 %376  ;;  %v362_v59 = vpop.permute.xlu1 %361 }
 0x180   : > { %v391_v61 = vpop.permute.xlu0 %390  ;;  %v364_v62 = vpop.permute.xlu1 %363 }
 0x181   : > { %v368_v7 = vsel %vm367_vm1, %v362_v59, %v364_v62  ;;  %v369_v8 = vsel %vm367_vm1, %v364_v62, %v362_v59 }
 0x182   : > { %v372_v20 = vmul.f32 %v370_v5, %v369_v8  ;;  %v373_v21 = vmul.f32 %v371_v6, %v368_v7  ;;  %v455_v5 = vld [vmem:[#allocation7 + $0x78] sm:$0xff] }
 0x184   : > { %v405_v0 = vpop.permute.xlu0 %404  ;;  %v379_v1 = vpop.permute.xlu1 %378  ;;  %v374_v42 = vadd.f32 %v372_v20, %v359_v31  ;;  %v375_v22 = vadd.f32 %v373_v21, %v360_v25  ;;  %v468_v21 = vld [vmem:[#allocation7 + $0x80] sm:$0xff]  ;;  %v469_v25 = vld [vmem:[#allocation7 + $0x88] sm:$0xff] }
 0x185   : > { %v381_v13 = vsel %vm380_vm2, %v377_v58, %v379_v1  ;;  %v382_v14 = vsel %vm380_vm2, %v379_v1, %v377_v58 }
 0x186   : > { %v386_v32 = vmul.f32 %v384_v12, %v382_v14  ;;  %v387_v33 = vmul.f32 %v385_v15, %v381_v13 }
 0x188   : > { %v393_v3 = vpop.permute.xlu1 %392  ;;  %v419_v4 = vpop.permute.xlu0 %418  ;;  %v388_v47 = vadd.f32 %v386_v32, %v374_v42  ;;  %v389_v16 = vadd.f32 %v387_v33, %v375_v22 }
 0x189   : > { %v395_v28 = vsel %vm394_vm3, %v391_v61, %v393_v3  ;;  %v396_v23 = vsel %vm394_vm3, %v393_v3, %v391_v61 }
 0x18a   : > { %v400_v43 = vmul.f32 %v398_v26, %v396_v23  ;;  %v401_v44 = vmul.f32 %v399_v27, %v395_v28 }
 0x18c   : > { %v407_v10 = vpop.permute.xlu1 %406  ;;  %v433_v34 = vpop.permute.xlu0 %432  ;;  %v402_v61 = vadd.f32 %v400_v43, %v388_v47  ;;  %v403_v62 = vadd.f32 %v401_v44, %v389_v16 }
 0x18d   : > { %v409_v40 = vsel %vm408_vm4, %v405_v0, %v407_v10  ;;  %v410_v41 = vsel %vm408_vm4, %v407_v10, %v405_v0 }
 0x18e   : > { %v414_v50 = vmul.f32 %v412_v37, %v410_v41  ;;  %v415_v51 = vmul.f32 %v413_v39, %v409_v40 }
 0x190   : > { %v421_v35 = vpop.permute.xlu1 %420  ;;  %v447_v0 = vpop.permute.xlu0 %446  ;;  %v416_v6 = vadd.f32 %v414_v50, %v402_v61  ;;  %v417_v7 = vadd.f32 %v415_v51, %v403_v62 }
 0x191   : > { %v423_v2 = vsel %vm422_vm5, %v419_v4, %v421_v35  ;;  %v424_v30 = vsel %vm422_vm5, %v421_v35, %v419_v4  ;;  %v454_v4 = vld [vmem:[#allocation7 + $0x70] sm:$0xff] }
 0x192   : > { %v428_v1 = vmul.f32 %v426_v45, %v423_v2  ;;  %v429_v3 = vmul.f32 %v427_v46, %v424_v30 }
 0x194   : > { %v435_v52 = vpop.permute.xlu1 %434  ;;  %v430_v15 = vadd.f32 %v428_v1, %v416_v6  ;;  %v431_v13 = vadd.f32 %v429_v3, %v417_v7  ;;  %v461_v26 = vpop.permute.xlu0 %460 }
 0x195   : > { %v437_v58 = vsel %vm436_vm6, %v433_v34, %v435_v52  ;;  %v438_v59 = vsel %vm436_vm6, %v435_v52, %v433_v34 }
 0x196   : > { %v442_v8 = vmul.f32 %v440_v53, %v437_v58  ;;  %v443_v9 = vmul.f32 %v441_v54, %v438_v59 }
 0x198   : > { %v449_v10 = vpop.permute.xlu1 %448  ;;  %v444_v27 = vadd.f32 %v442_v8, %v430_v15  ;;  %v445_v28 = vadd.f32 %v443_v9, %v431_v13 }
 0x199   : > { %v451_v11 = vsel %vm450_vm7, %v447_v0, %v449_v10  ;;  %v452_v12 = vsel %vm450_vm7, %v449_v10, %v447_v0 }
 0x19a   : > { %v456_v14 = vmul.f32 %v454_v4, %v451_v11  ;;  %v457_v20 = vmul.f32 %v455_v5, %v452_v12 }
 0x19c   : > { %v463_v23 = vpop.permute.xlu1 %462  ;;  %v458_v33 = vadd.f32 %v456_v14, %v444_v27  ;;  %v459_v34 = vadd.f32 %v457_v20, %v445_v28 }
 0x19d   : > { %v465_v31 = vsel %vm464_vm8, %v461_v26, %v463_v23  ;;  %v466_v32 = vsel %vm464_vm8, %v463_v23, %v461_v26 }
 0x19e   : > { %v470_v35 = vmul.f32 %v468_v21, %v465_v31  ;;  %v471_v37 = vmul.f32 %v469_v25, %v466_v32 }
 0x1a0   : > { %v472_v39 = vadd.f32 %v470_v35, %v458_v33  ;;  %v473_v40 = vadd.f32 %v471_v37, %v459_v34 }
 0x1a2   : > { %v477_v63 = vrot.slane %v472_v39, %v1459_v17  ;;  %v481_v41 = vrot.slane %v473_v40, %v1459_v17  ;;  %v491_v42 = vrot.slane %v472_v39, %v1462_v18  ;;  %v495_v22 = vrot.slane %v473_v40, %v1462_v18 }
 0x1a3   : > { %v507_v2 = vrot.slane %v472_v39, %v1465_v19  ;;  %v511_v30 = vrot.slane %v473_v40, %v1465_v19  ;;  %v523_v18 = vrot.slane %v472_v39, %v1470_v24  ;;  %v527_v52 = vrot.slane %v473_v40, %v1470_v24 }
 0x1a4   : > { %v486_v43 = vmul.f32 %v1577_v57, %v477_v63  ;;  %v487_v44 = vmul.f32 %v1577_v57, %v481_v41  ;;  %v500_v45 = vmul.f32 %v1573_v55, %v491_v42  ;;  %v501_v46 = vmul.f32 %v1573_v55, %v495_v22 }
 0x1a5   : > { %v516_v17 = vmul.f32 %v1575_v56, %v507_v2  ;;  %v517_v50 = vmul.f32 %v1575_v56, %v511_v30  ;;  %v530_v51 = vpop.permute.xlu0 %529  ;;  %v543_v54 = vrot.slane %v473_v40, %v1477_v29  ;;  %v539_v58 = vrot.slane %v472_v39, %v1477_v29 }
 0x1a6   : > { %v502_v47 = vadd.f32 %v500_v45, %v486_v43  ;;  %v503_v16 = vadd.f32 %v501_v46, %v487_v44  ;;  %v532_v59 = vmul.f32 %v530_v51, %v523_v18  ;;  %v533_v19 = vmul.f32 %v530_v51, %v527_v52 }
 0x1a7   : > { %v559_v56 = vrot.slane %v473_v40, %v1484_v36  ;;  %v555_v3 = vrot.slane %v472_v39, %v1484_v36  ;;  %v571_v24 = vrot.slane %v472_v39, %v1491_v49  ;;  %v575_v5 = vrot.slane %v473_v40, %v1491_v49 }
 0x1a8   : > { %v518_v57 = vadd.f32 %v516_v17, %v502_v47  ;;  %v519_v53 = vadd.f32 %v517_v50, %v503_v16  ;;  %v591_v13 = vrot.slane %v473_v40, %v1494_v60  ;;  %v587_v14 = vrot.slane %v472_v39, %v1494_v60 }
 0x1aa   : > { %v534_v0 = vadd.f32 %v532_v59, %v518_v57  ;;  %v535_v1 = vadd.f32 %v533_v19, %v519_v53  ;;  %v578_v4 = vpop.permute.xlu0 %577 }
 0x1ab   : > { %v580_v10 = vmul.f32 %v578_v4, %v571_v24  ;;  %v581_v11 = vmul.f32 %v578_v4, %v575_v5 }
 0x1ad   : > { %v546_v55 = vpop.permute.xlu1 %545 }
 0x1ae   : > { %v548_v61 = vmul.f32 %v546_v55, %v539_v58  ;;  %v549_v62 = vmul.f32 %v546_v55, %v543_v54 }
 0x1b0   : > { %v550_v7 = vadd.f32 %v548_v61, %v534_v0  ;;  %v551_v8 = vadd.f32 %v549_v62, %v535_v1 }
 0x1b2   : > { %v562_v6 = vpop.permute.xlu1 %561 }
 0x1b3   : > { %v564_v9 = vmul.f32 %v562_v6, %v555_v3  ;;  %v565_v29 = vmul.f32 %v562_v6, %v559_v56 }
 0x1b5   : > { %v566_v12 = vadd.f32 %v564_v9, %v550_v7  ;;  %v567_v15 = vadd.f32 %v565_v29, %v551_v8 }
 0x1b7   : > { %v594_v20 = vpop.permute.xlu1 %593  ;;  %v583_v36 = vadd.f32 %v581_v11, %v567_v15  ;;  %v582_v21 = vadd.f32 %v580_v10, %v566_v12 }
 0x1b8   : > { %v596_v25 = vmul.f32 %v594_v20, %v587_v14  ;;  %v597_v26 = vmul.f32 %v594_v20, %v591_v13 }
 0x1ba   : > { %v599_v49 = vadd.f32 %v597_v26, %v583_v36  ;;  %v598_v27 = vadd.f32 %v596_v25, %v582_v21 }
 0x1bc   : > { %v602_v28 = vpop.permute.xlu1 %601 }
 0x1bd   : > { %v604_v23 = vadd.f32 %v602_v28, %v598_v27  ;;  %v605_v31 = vadd.f32 %v602_v28, %v599_v49 }
 0x1bf   : > { %v606_v32 = vmax.f32 %v604_v23, 0.0  ;;  %v607_v33 = vmax.f32 %v605_v31, 0.0 }
 0x1c1   : > { %v634_v34 = vcombine.low %v606_v32, %v607_v33  ;;  %v716_v35 = vcombine.high %v606_v32, %v607_v33 }
 0x1c3   : > { %v641_v60 = vrot.slane %v634_v34, %v1529_v38  ;;  %v723_v37 = vrot.slane %v716_v35, %v1529_v38 }
 0x1c5   : > { %v648_v39 = vrot.slane %v641_v60, %v1529_v38  ;;  %v665_v40 = vcombine.high %v641_v60, %v641_v60  ;;  %v730_v63 = vrot.slane %v723_v37, %v1529_v38  ;;  %v747_v41 = vcombine.high %v723_v37, %v723_v37 }
 0x1c7   : > { %898 = vst.msk [vmem:[%s1545_s6 + $0x1] ss:$8 sm:$0x3] %vm1539_vm0, %v648_v39  ;;  %v672_v42 = vrot.slane %v665_v40, %v1529_v38  ;;  %v682_v22 = vcombine.high %v648_v39, %v648_v39  ;;  %906 = vst.msk [vmem:[%s1545_s6 + $0x11] ss:$8 sm:$0x3] %vm1539_vm0, %v730_v63  ;;  %v754_v43 = vrot.slane %v747_v41, %v1529_v38 }
 0x1c8   : > { %v764_v44 = vcombine.high %v730_v63, %v730_v63 }
 0x1c9   : > { %900 = vst.msk [vmem:[%s1545_s6 + $0x3] ss:$8 sm:$0x3] %vm1539_vm0, %v672_v42  ;;  %902 = vst.msk [vmem:[%s1545_s6 + $0x5] ss:$8 sm:$0x3] %vm1539_vm0, %v682_v22  ;;  %v692_v45 = vcombine.high %v672_v42, %v672_v42  ;;  %v774_v38 = vcombine.high %v754_v43, %v754_v43 }
 0x1ca   : > { %908 = vst.msk [vmem:[%s1545_s6 + $0x13] ss:$8 sm:$0x3] %vm1539_vm0, %v754_v43  ;;  %910 = vst.msk [vmem:[%s1545_s6 + $0x15] ss:$8 sm:$0x3] %vm1539_vm0, %v764_v44 }
 0x1cb   : > { %904 = vst.msk [vmem:[%s1545_s6 + $0x7] ss:$8 sm:$0x3] %vm1539_vm0, %v692_v45  ;;  %912 = vst.msk [vmem:[%s1545_s6 + $0x17] ss:$8 sm:$0x3] %vm1539_vm0, %v774_v38 }
 0x1cc   : > { %1137 = shalt.err (!%p1134_p6)
}
 0x1cd   : > { %s1138_s17 = scalar_lea.hbm %s1635_s16, 512  ;;  %s1142_s29 = scalar_lea.hbm %s1703_s3, 1024 }
 0x1ce   : > { %p1139_p12 = scmp.ne.s32.totalorder %s1635_s16, %s1138_s17  ;;  %p1143_p11 = scmp.lt.u32.totalorder %s1635_s16, %s1703_s3 }
 0x1cf   : > { %p1144_p7 = scmp.lt.u32.totalorder %s1142_s29, %s1138_s17  ;;  %p1146_p8 = scmp.lt.u32.totalorder %s1138_s17, %s1635_s16 }
 0x1d0   : > { %p1140_p13 = pnand %p1139_p12, %p1724_p4 }
 0x1d1   : > { %p1145_p3 = por %p1144_p7, %p1143_p11 }
 0x1d2   : > { %p1141_p1 = pneg %p1140_p13 }
 0x1d3   : > { %p1147_p5 = por %p1146_p8, %p1145_p3 }
 0x1d5   : > { %p1148_p10 = pnand %p1147_p5, %p1141_p1 }
 0x1d7   : > { %1151 = shalt.err (!%p1148_p10)
}
 0x1d8   : > { %s1229_s6 = smov 256  }
 0x1d9   : > { %930 = dma.vmem_to_hbm [thread:$0]  (%p1724_p4), %s1649_s27, 512, %s1635_s16, %s780_s10, %s1229_s6, %s1229_s6, %s1215_s23  }
 0x1da PF: > { %s808_s7 = sand.u32 1, %s1182_s12   ;;  %p1725_p2 = scmp.ne.s32.totalorder %s1712_s25, 0 }
 0x1db   : > { %p1726_p0 = scmp.ge.s32.totalorder %s1194_s15, 2  ;;  %s809_s4 = scalar_lea.sflag [#allocation4], %s808_s7 }
 0x1dd   : > { %p944_p9 = pnand %p1726_p0, %p1725_p2 }
 0x1df   : > { %1177 = dma.done.wait (!%p944_p9), %s809_s4, 512  }
 0x1e0   : > { %1179 = vsyncadd (!%p944_p9), %s809_s4, 4294966784  ;;  %p17_p6 = scmp.ge.s32.totalorder %s1275_s18, 4   ;;  %s1727_s12 = smov %s1186_s13 }
 0x1e1   : > { %s1728_s13 = smov %s1190_s14  ;;  %s1729_s14 = smov %s1287_s21 }
 0x1e2   : > { %s1730_s15 = smov %s1275_s18  ;;  %19 = sbr.rel (!%p17_p6) target bundleno = 6 (0x6), region = 108 }
 0x1e9   :  { %814 = vsyncpa [#allocation3], 1 }
 0x1ea   :  { %816 = vsyncpa [#allocation3 + $0x1], 1 }
 0x1eb   :  { %817 = vsyncpa [#allocation6], 1 }
 0x1ec   :  { %818 = vsyncpa [#allocation4], 1 }
 0x1ed   :  { %820 = vsyncpa [#allocation4 + $0x1], 1 }

</bundles_post_ra>
